<compile_context>
chip_gen: v7x
topology: tpu7x:2x2x1
jax: 0.10.0
libtpu: 0.0.40
codegen_flags: <defaults>
</compile_context>

<pallas_src>
import math

import jax
import jax.numpy as jnp
from jax.experimental import pallas as pl
from jax.experimental.pallas import tpu as pltpu


def qnetwork_kernel_t(xT_ref, w1T_ref, b1_ref, w2T_ref, b2_ref, w3T_ref,
                      b3_ref, out_ref):
    """Fused forward in batch-in-lanes layout.

    xT_ref : [S, tb]      w1T_ref: [H, S]   b1_ref: [H, 1]
    w2T_ref: [H, H]       b2_ref : [H, 1]
    w3T_ref: [A, H]       b3_ref : [A, 1]
    out_ref: [A, tb]   (q^T)
    """
    xT = xT_ref[...]                                            # [S, tb]

    # fc1 on the MXU (K = S is tiny; Mosaic pads it internally, MXU has slack).
    h1 = jnp.dot(w1T_ref[...], xT, preferred_element_type=jnp.float32)
    h1 = jnp.maximum(h1 + b1_ref[...], 0.0)                     # [H, tb]

    h2 = jnp.dot(w2T_ref[...], h1, preferred_element_type=jnp.float32)
    h2 = jnp.maximum(h2 + b2_ref[...], 0.0)                     # [H, tb]

    q = jnp.dot(w3T_ref[...], h2, preferred_element_type=jnp.float32)
    out_ref[...] = (q + b3_ref[...]).astype(out_ref.dtype)      # [A, tb]


def _cost_estimate(B, S, H, A):
    flops = 2 * B * (S * H + H * H + H * A)
    bytes_accessed = 4 * (B * (S + A) + S * H + H * H + H * A + 2 * H + A)
    return pl.CostEstimate(flops=flops, transcendentals=0,
                           bytes_accessed=bytes_accessed)


def qnetwork_forward(state, params, *, tile_b=8192, use_core_parallel=False):
    """QNetwork forward pass via pallas_call.

    state:  [B, state_size] float32
    params: dict with w1 [S,64], b1 [1,64], w2 [64,64], b2 [1,64],
            w3 [64,A], b3 [1,A]   (weights stored [in, out])
    use_core_parallel: set True on v7x (2 TensorCores) to shard the batch
            grid axis across cores; leave False on v5e/v6e.
    """
    B, S = state.shape
    H = params["w1"].shape[1]
    A = params["w3"].shape[1]

    # Batch-in-lanes layout: transpose input and weights (all tiny passes).
    xT = state.T                                   # [S, B]
    w1T = params["w1"].T                           # [H, S]
    w2T = params["w2"].T                           # [H, H]
    w3T = params["w3"].T                           # [A, H]
    b1 = params["b1"].reshape(H, 1)
    b2 = params["b2"].reshape(H, 1)
    b3 = params["b3"].reshape(A, 1)
    weights = (w1T, b1, w2T, b2, w3T, b3)

    if B <= tile_b:
        # Single shot: no grid, no pipelining machinery — everything resident
        # in VMEM for the single invocation.
        outT = pl.pallas_call(
            qnetwork_kernel_t,
            out_shape=jax.ShapeDtypeStruct((A, B), jnp.float32),
            cost_estimate=_cost_estimate(B, S, H, A),
        )(xT, *weights)
        return outT.T                              # [B, A]

    # Tiled path: large batch tile over the lane (batch) axis.
    assert tile_b % 128 == 0, "tile_b must be a multiple of 128 (lane tiling)"
    num_tiles = pl.cdiv(B, tile_b)
    B_pad = num_tiles * tile_b
    if B_pad != B:
        # TODO(synk): the ragged last tile could be masked in-kernel instead
        # of zero-padding the (cheap, [S, B]) input; padded columns are
        # sliced off below and cannot affect kept outputs.
        xT = jnp.pad(xT, ((0, 0), (0, B_pad - B)))

    # Parameters are tiny -> present the full arrays to every grid step
    # (constant block index => resident across the whole batch loop).
    def param_spec(shape):
        return pl.BlockSpec(shape, lambda i: (0, 0))

    dim_sem = (pltpu.CORE_PARALLEL,) if use_core_parallel else ("parallel",)

    outT = pl.pallas_call(
        qnetwork_kernel_t,
        out_shape=jax.ShapeDtypeStruct((A, B_pad), jnp.float32),
        grid_spec=pltpu.PrefetchScalarGridSpec(
            num_scalar_prefetch=0,
            grid=(num_tiles,),
            in_specs=[
                pl.BlockSpec((S, tile_b), lambda i: (0, i)),   # x^T tile
                param_spec((H, S)),                            # w1^T
                param_spec((H, 1)),                            # b1
                param_spec((H, H)),                            # w2^T
                param_spec((H, 1)),                            # b2
                param_spec((A, H)),                            # w3^T
                param_spec((A, 1)),                            # b3
            ],
            out_specs=pl.BlockSpec((A, tile_b), lambda i: (0, i)),
        ),
        compiler_params=pltpu.CompilerParams(
            dimension_semantics=dim_sem,
            # Budgeted against v7x's 64 MiB physical VMEM per TC; well within
            # v5e/v6e.  Actual per-step footprint at tile_b=8192 is ~5 MiB.
            vmem_limit_bytes=32 * 1024 * 1024),
        cost_estimate=_cost_estimate(B_pad, S, H, A),
    )(xT, *weights)
    return outT[:, :B].T                           # [B, A]


def init_qnetwork_params(key, state_size, action_size, hidden=64):
    """Deterministic init mirroring PyTorch nn.Linear default
    (uniform(-1/sqrt(fan_in), +1/sqrt(fan_in)) for weight and bias)."""
    def linear(k, fan_in, fan_out):
        kw, kb = jax.random.split(k)
        bound = 1.0 / math.sqrt(fan_in)
        # stored as [in, out] (transposed relative to torch's [out, in])
        w = jax.random.uniform(kw, (fan_in, fan_out), jnp.float32,
                               minval=-bound, maxval=bound)
        b = jax.random.uniform(kb, (1, fan_out), jnp.float32,
                               minval=-bound, maxval=bound)
        return w, b

    k1, k2, k3 = jax.random.split(key, 3)
    w1, b1 = linear(k1, state_size, hidden)
    w2, b2 = linear(k2, hidden, hidden)
    w3, b3 = linear(k3, hidden, action_size)
    return {"w1": w1, "b1": b1, "w2": w2, "b2": b2, "w3": w3, "b3": b3}


def qnetwork_reference(state, p):
    """Pure-JAX reference for correctness checking."""
    h1 = jnp.maximum(state @ p["w1"] + p["b1"], 0.0)
    h2 = jnp.maximum(h1 @ p["w2"] + p["b2"], 0.0)
    return h2 @ p["w3"] + p["b3"]


# TODO(synk): de_bucketize / iterate_all_states are host-side state-space
# enumeration (itertools over bucket indices), not part of the network's
# forward pass, so they are intentionally not ported to Pallas.


if __name__ == "__main__":
    # Small shapes consistent with the module: a bucketized continuous state
    # (e.g. 6 state variables) and a small discrete action space.
    batch, state_size, action_size = 8, 6, 3

    key = jax.random.PRNGKey(0)
    k_params, k_state, k_big = jax.random.split(key, 3)

    params = init_qnetwork_params(k_params, state_size, action_size)
    state = jax.random.normal(k_state, (batch, state_size), jnp.float32)

    # 1) Small batch -> single-shot (no-grid) path.
    q_pallas = jax.block_until_ready(qnetwork_forward(state, params))
    q_ref = qnetwork_reference(state, params)
    assert q_pallas.shape == (batch, action_size)
    assert jnp.allclose(q_pallas, q_ref, atol=1e-4, rtol=1e-4), \
        "Pallas output does not match reference (small batch)"

    # 2) Ragged larger batch -> tiled/pipelined path (pad + slice).
    big_batch = 1030
    big_state = jax.random.normal(k_big, (big_batch, state_size), jnp.float32)
    q_big = jax.block_until_ready(
        qnetwork_forward(big_state, params, tile_b=512))
    q_big_ref = qnetwork_reference(big_state, params)
    assert q_big.shape == (big_batch, action_size)
    assert jnp.allclose(q_big, q_big_ref, atol=1e-4, rtol=1e-4), \
        "Pallas output does not match reference (tiled batch)"

    print("KERNEL_OK")
</pallas_src>

<mosaic_0001>
module attributes {stable_mosaic.version = 11 : i64} {
  func.func @qnetwork_kernel_t(%arg0: memref<6x8xf32, #tpu.memory_space<vmem>>, %arg1: memref<64x6xf32, #tpu.memory_space<vmem>>, %arg2: memref<64x1xf32, #tpu.memory_space<vmem>>, %arg3: memref<64x64xf32, #tpu.memory_space<vmem>>, %arg4: memref<64x1xf32, #tpu.memory_space<vmem>>, %arg5: memref<3x64xf32, #tpu.memory_space<vmem>>, %arg6: memref<3x1xf32, #tpu.memory_space<vmem>>, %arg7: memref<3x8xf32, #tpu.memory_space<vmem>>) attributes {dimension_semantics = [], scalar_prefetch = 0 : i64, scratch_operands = 0 : i64, tpu.core_type = #tpu.core_type<tc>} {
    %c0 = arith.constant 0 : index
    %c0_0 = arith.constant 0 : index
    %0 = vector.load %arg0[%c0, %c0_0] : memref<6x8xf32, #tpu.memory_space<vmem>>, vector<6x8xf32>
    %c0_1 = arith.constant 0 : index
    %c0_2 = arith.constant 0 : index
    %1 = vector.load %arg1[%c0_1, %c0_2] : memref<64x6xf32, #tpu.memory_space<vmem>>, vector<64x6xf32>
    %cst = arith.constant dense<0.000000e+00> : vector<64x8xf32>
    %2 = tpu.matmul %1, %0, %cst {dimension_numbers = #tpu.dot_dimension_numbers<[1], [0], [0], [1], [0, 0, 1, 1], [], []>} : vector<64x6xf32>, vector<6x8xf32>, vector<64x8xf32> -> vector<64x8xf32>
    %c0_3 = arith.constant 0 : index
    %c0_4 = arith.constant 0 : index
    %3 = vector.load %arg2[%c0_3, %c0_4] : memref<64x1xf32, #tpu.memory_space<vmem>>, vector<64x1xf32>
    %4 = vector.broadcast %3 : vector<64x1xf32> to vector<64x8xf32>
    %5 = arith.addf %2, %4 : vector<64x8xf32>
    %cst_5 = arith.constant 0.000000e+00 : f32
    %6 = vector.broadcast %cst_5 : f32 to vector<64x8xf32>
    %7 = arith.maximumf %5, %6 : vector<64x8xf32>
    %c0_6 = arith.constant 0 : index
    %c0_7 = arith.constant 0 : index
    %8 = vector.load %arg3[%c0_6, %c0_7] : memref<64x64xf32, #tpu.memory_space<vmem>>, vector<64x64xf32>
    %cst_8 = arith.constant dense<0.000000e+00> : vector<64x8xf32>
    %9 = tpu.matmul %8, %7, %cst_8 {dimension_numbers = #tpu.dot_dimension_numbers<[1], [0], [0], [1], [0, 0, 1, 1], [], []>} : vector<64x64xf32>, vector<64x8xf32>, vector<64x8xf32> -> vector<64x8xf32>
    %c0_9 = arith.constant 0 : index
    %c0_10 = arith.constant 0 : index
    %10 = vector.load %arg4[%c0_9, %c0_10] : memref<64x1xf32, #tpu.memory_space<vmem>>, vector<64x1xf32>
    %11 = vector.broadcast %10 : vector<64x1xf32> to vector<64x8xf32>
    %12 = arith.addf %9, %11 : vector<64x8xf32>
    %cst_11 = arith.constant 0.000000e+00 : f32
    %13 = vector.broadcast %cst_11 : f32 to vector<64x8xf32>
    %14 = arith.maximumf %12, %13 : vector<64x8xf32>
    %c0_12 = arith.constant 0 : index
    %c0_13 = arith.constant 0 : index
    %15 = vector.load %arg5[%c0_12, %c0_13] : memref<3x64xf32, #tpu.memory_space<vmem>>, vector<3x64xf32>
    %cst_14 = arith.constant dense<0.000000e+00> : vector<3x8xf32>
    %16 = tpu.matmul %15, %14, %cst_14 {dimension_numbers = #tpu.dot_dimension_numbers<[1], [0], [0], [1], [0, 0, 1, 1], [], []>} : vector<3x64xf32>, vector<64x8xf32>, vector<3x8xf32> -> vector<3x8xf32>
    %c0_15 = arith.constant 0 : index
    %c0_16 = arith.constant 0 : index
    %17 = vector.load %arg6[%c0_15, %c0_16] : memref<3x1xf32, #tpu.memory_space<vmem>>, vector<3x1xf32>
    %18 = vector.broadcast %17 : vector<3x1xf32> to vector<3x8xf32>
    %19 = arith.addf %16, %18 : vector<3x8xf32>
    %c0_17 = arith.constant 0 : index
    %c0_18 = arith.constant 0 : index
    %20 = vector.load %arg7[%c0_17, %c0_18] : memref<3x8xf32, #tpu.memory_space<vmem>>, vector<3x8xf32>
    tpu.vector_store %arg7[%c0_17, %c0_18], %19 {strides = array<i32>} : memref<3x8xf32, #tpu.memory_space<vmem>>, vector<3x8xf32>,
    return
  }
}

</mosaic_0001>

<bundles_post_ra>
// kernel: tpu_custom_call.1
= control target key start
LH: loop header
LB: loop body
LE: loop exit
PB: predicated region body
PF: predicated region fallthrough
CT: control target
= control target key end

     0   :  { %vm109_vm0 = vcmask 1045504   ;;  %vm84_vm1 = vcmask 48128   ;;  %v688_v4 = vmov 0   ;;  %s867_s0 = inlined_call_operand.vmem [shape: f32[6,8], index: 0, kind: input, shape index: {}]   ;;  %s868_s1 = inlined_call_operand.vmem [shape: f32[64,6], index: 1, kind: input, shape index: {}]   ;;  %s869_s2 = inlined_call_operand.vmem [shape: f32[64,1], index: 2, kind: input, shape index: {}]   ;;  %s870_s3 = inlined_call_operand.vmem [shape: f32[64,64], index: 3, kind: input, shape index: {}]   ;;  %s871_s4 = inlined_call_operand.vmem [shape: f32[64,1], index: 4, kind: input, shape index: {}]   ;;  %s872_s5 = inlined_call_operand.vmem [shape: f32[3,64], index: 5, kind: input, shape index: {}]   ;;  %s873_s6 = inlined_call_operand.vmem [shape: f32[3,1], index: 6, kind: input, shape index: {}]   ;;  %s874_s7 = inlined_call_operand.hbm [shape: f32[3,8], index: 7, kind: output, shape index: {}]  }
   0x1   :  { %v27_v0 = vld [vmem:[%s867_s0] sm:$0x3f]  ;;  %v29_v2 = vld [vmem:[%s868_s1 + $0x8] sm:$0xff]  ;;  %v30_v3 = vld [vmem:[%s868_s1 + $0x10] sm:$0xff]  ;;  %662 = vset.pattern.permute.xlu0 %v688_v4  ;;  %663 = vset.pattern.permute.xlu1 %v688_v4 }
   0x2   :  { %v28_v1 = vld [vmem:[%s868_s1] sm:$0xff]  ;;  %568 = vmatprep.subr.msk.mxu0 %vm109_vm0, %v27_v0  ;;  %v38_v6 = vld [vmem:[%s869_s2 + $0x10] sm:$0xff]  ;;  %v31_v7 = vld [vmem:[%s868_s1 + $0x18] sm:$0xff] }
   0x3   :  { %570 = vmatprep.mubr.msk.f32.mxu0 %vm84_vm1, %v28_v1  ;;  %569 = vmatpush3.msk.msra.mxu0 %vm109_vm0, %v27_v0  ;;  %v36_v5 = vld [vmem:[%s869_s2] sm:$0xff]  ;;  %v37_v9 = vld [vmem:[%s869_s2 + $0x8] sm:$0xff]  ;;  %v39_v10 = vld [vmem:[%s869_s2 + $0x18] sm:$0xff] }
   0x4   :  { %571 = vmatmul.mubr.msk.f32.vlgmr.msra.gmra.mrb[0].mxu0 %vm84_vm1, %v29_v2  ;;  %46 = vperm.xlu0 %662, %v36_v5   ;;  %v32_v8 = vld [vmem:[%s868_s1 + $0x20] sm:$0xff]  ;;  %v33_v11 = vld [vmem:[%s868_s1 + $0x28] sm:$0xff] }
   0x5   :  { %573 = vmatprep.mubr.msk.f32.mxu0 %vm84_vm1, %v30_v3  ;;  %56 = vperm.xlu1 %663, %v38_v6  }
   0x8   :  { %574 = vmatmul.mubr.msk.f32.gmra.mrb[2].mxu0 %vm84_vm1, %v31_v7  ;;  %51 = vperm.xlu0 %662, %v37_v9  }
   0x9   :  { %576 = vmatprep.mubr.msk.f32.mxu0 %vm84_vm1, %v32_v8 }
   0xa   :  { %12 = vsyncpa [#allocation3], 0  ;;  %v34_v12 = vld [vmem:[%s868_s1 + $0x30] sm:$0xff]  ;;  %v40_v13 = vld [vmem:[%s869_s2 + $0x20] sm:$0xff]  ;;  %61 = vperm.xlu1 %663, %v39_v10   ;;  %vm282_vm2 = vcmask 523264   ;;  %v689_v7 = vmov 0.0|0.0  }
   0xb   :  { %v41_v14 = vld [vmem:[%s869_s2 + $0x28] sm:$0xff]  ;;  %v35_v15 = vld [vmem:[%s868_s1 + $0x38] sm:$0xff]  ;;  %v42_v16 = vld [vmem:[%s869_s2 + $0x30] sm:$0xff]  ;;  %645 = vmatprep.subr.bf16.mxu0 %v689_v7  ;;  %vm690_vm3 = vmmov 0   ;;  %v691_v8 = vmov 0.0   ;;  %vm500_vm4 = vcmask 59392  }
   0xc   :  { %577 = vmatmul.mubr.msk.f32.gmra.mrb[4].mxu0 %vm84_vm1, %v33_v11  ;;  %66 = vperm.xlu0 %662, %v40_v13   ;;  %v43_v17 = vld [vmem:[%s869_s2 + $0x38] sm:$0xff]  ;;  %v234_v18 = vld [vmem:[%s871_s4] sm:$0xff]  ;;  %v235_v19 = vld [vmem:[%s871_s4 + $0x8] sm:$0xff]  ;;  %s692_s2 = smov [#allocation2]  }
   0xd   :  { %579 = vmatprep.mubr.msk.f32.mxu0 %vm84_vm1, %v34_v12  ;;  %v236_v20 = vld [vmem:[%s871_s4 + $0x10] sm:$0xff]  ;;  %v237_v21 = vld [vmem:[%s871_s4 + $0x18] sm:$0xff]  ;;  %v238_v22 = vld [vmem:[%s871_s4 + $0x20] sm:$0xff]  ;;  %s508_s16 = sshll.u32 %s692_s2, 4  ;;  %s509_s16 = int_to_ptr.vmem [resolvable:$true] %s508_s16 }
   0xe   :  { %71 = vperm.xlu1 %663, %v41_v14   ;;  %v239_v23 = vld [vmem:[%s871_s4 + $0x28] sm:$0xff]  ;;  %v240_v24 = vld [vmem:[%s871_s4 + $0x30] sm:$0xff]  ;;  %v241_v25 = vld [vmem:[%s871_s4 + $0x38] sm:$0xff]  ;;  %s664_s17 = scalar_lea.vmem %s509_s16, 64  ;;  %p669_p1 = scmp.lt.s32.totalorder %s509_s16, %s509_s16 }
   0xf   :  { %v421_v26 = vld [vmem:[%s873_s6] sm:$0x7]  ;;  %v227_v0 = vld [vmem:[%s870_s3 + $0x8] sm:$0xff]  ;;  %v228_v1 = vld [vmem:[%s870_s3 + $0x10] sm:$0xff]  ;;  %p665_p0 = scmp.ne.s32.totalorder %s509_s16, %s664_s17  ;;  %p670_p2 = scmp.lt.s32.totalorder %s664_s17, %s664_s17 }
  0x10   :  { %580 = vmatmul.mubr.msk.f32.gmra.mrb[6].mxu0 %vm84_vm1, %v35_v15  ;;  %76 = vperm.xlu0 %662, %v42_v16   ;;  %v226_v27 = vld [vmem:[%s870_s3] sm:$0xff]  ;;  %v229_v2 = vld [vmem:[%s870_s3 + $0x18] sm:$0xff]  ;;  %v231_v4 = vld [vmem:[%s870_s3 + $0x28] sm:$0xff] }
  0x11   :  { %598 = vmatprep.mubr.msk.f32.mxu1 %vm282_vm2, %v226_v27  ;;  %v230_v3 = vld [vmem:[%s870_s3 + $0x20] sm:$0xff]  ;;  %v232_v5 = vld [vmem:[%s870_s3 + $0x30] sm:$0xff]  ;;  %v233_v6 = vld [vmem:[%s870_s3 + $0x38] sm:$0xff]  ;;  %626 = vmatprep.mubr.msk.f32.mxu0 %vm690_vm3, %v691_v8  ;;  %p671_p3 = por %p670_p2, %p669_p1 }
  0x12   :  { %81 = vperm.xlu1 %663, %v43_v17  }
  0x13   :  { %p672_p4 = pnand %p671_p3, %p665_p0 }
  0x14   :  { %244 = vperm.xlu0 %662, %v234_v18  }
  0x16   :  { %249 = vperm.xlu1 %663, %v235_v19  }
  0x18   :  { %254 = vperm.xlu0 %662, %v236_v20  }
  0x1a   :  { %259 = vperm.xlu1 %663, %v237_v21  }
  0x1c   :  { %264 = vperm.xlu0 %662, %v238_v22  }
  0x1e   :  { %269 = vperm.xlu1 %663, %v239_v23  }
  0x20   :  { %274 = vperm.xlu0 %662, %v240_v24  }
  0x22   :  { %279 = vperm.xlu1 %663, %v241_v25  }
  0x24   :  { %424 = vperm.xlu0 %662, %v421_v26  }
  0x83   :  { %v47_v28 = vpop.permute.xlu0 %46 }
  0x84   :  { %v57_v29 = vpop.permute.xlu1 %56 }
  0x87   :  { %v52_v30 = vpop.permute.xlu0 %51 }
  0x89   :  { %v62_v31 = vpop.permute.xlu1 %61 }
  0x8b   :  { %v67_v44 = vpop.permute.xlu0 %66 }
  0x8d   :  { %v72_v41 = vpop.permute.xlu1 %71 }
  0x8f   :  { %v77_v56 = vpop.permute.xlu0 %76 }
  0x91   :  { %v82_v53 = vpop.permute.xlu1 %81 }
  0x93   :  { %v245_v10 = vpop.permute.xlu0 %244 }
  0x95   :  { %v250_v9 = vpop.permute.xlu1 %249 }
  0x97   :  { %v255_v13 = vpop.permute.xlu0 %254 }
  0x99   :  { %v260_v11 = vpop.permute.xlu1 %259 }
  0x9b   :  { %v265_v25 = vpop.permute.xlu0 %264 }
  0x9d   :  { %v270_v22 = vpop.permute.xlu1 %269 }
  0xd7   :  { %v572_v32 = vpop.f32.mrb[0].mxu0 }
  0xd8   :  { %v185_v33 = vadd.f32 %v572_v32, %v52_v30  ;;  %v179_v34 = vpop.f32.mrb[1].mxu0 }
  0xd9   :  { %v180_v35 = vadd.f32 %v179_v34, %v47_v28  ;;  %v280_v34 = vpop.permute.xlu1 %279 }
  0xda   :  { %v219_v36 = vmax.f32 %v185_v33, 0.0 }
  0xdb   :  { %v218_v37 = vmax.f32 %v180_v35, 0.0  ;;  %v575_v38 = vpop.f32.mrb[2].mxu0 }
  0xdc   :  { %v195_v39 = vadd.f32 %v575_v38, %v62_v31  ;;  %v189_v40 = vpop.f32.mrb[3].mxu0 }
  0xdd   :  { %v190_v42 = vadd.f32 %v189_v40, %v57_v29  ;;  %v629_v43 = vpack.c.bf16 %v219_v36, %v218_v37  ;;  %v275_v37 = vpop.permute.xlu0 %274 }
  0xde   :  { %v221_v45 = vmax.f32 %v195_v39, 0.0 }
  0xdf   :  { %v220_v46 = vmax.f32 %v190_v42, 0.0  ;;  %v578_v47 = vpop.f32.mrb[4].mxu0  ;;  %630 = vmatprep.subr.bf16.mxu1 %v629_v43 }
  0xe0   :  { %v205_v48 = vadd.f32 %v578_v47, %v72_v41  ;;  %v199_v49 = vpop.f32.mrb[5].mxu0  ;;  %632 = vmatpush3.bf16.msra.mxu1 %v629_v43 }
  0xe1   :  { %v633_v50 = vpack.c.bf16 %v221_v45, %v220_v46  ;;  %v200_v51 = vadd.f32 %v199_v49, %v67_v44  ;;  %v420_v45 = vld [vmem:[%s872_s5] sm:$0x7]  ;;  %v425_v46 = vpop.permute.xlu0 %424 }
  0xe2   :  { %v223_v52 = vmax.f32 %v205_v48, 0.0 }
  0xe3   :  { %v222_v54 = vmax.f32 %v200_v51, 0.0  ;;  %v581_v55 = vpop.f32.mrb[6].mxu0  ;;  %634 = vmatprep.subr.bf16.mxu1 %v633_v50 }
  0xe4   :  { %v215_v57 = vadd.f32 %v581_v55, %v82_v53  ;;  %v209_v58 = vpop.f32.mrb[7].mxu0  ;;  %636 = vmatpush3.bf16.msra.mxu1 %v633_v50 }
  0xe5   :  { %v637_v59 = vpack.c.bf16 %v223_v52, %v222_v54  ;;  %v210_v60 = vadd.f32 %v209_v58, %v77_v56 }
  0xe6   :  { %v225_v61 = vmax.f32 %v215_v57, 0.0 }
  0xe7   :  { %v224_v62 = vmax.f32 %v210_v60, 0.0  ;;  %638 = vmatprep.subr.bf16.mxu1 %v637_v59 }
  0xe8   :  { %640 = vmatpush3.bf16.msra.mxu1 %v637_v59 }
  0xe9   :  { %v641_v63 = vpack.c.bf16 %v225_v61, %v224_v62 }
  0xeb   :  { %642 = vmatprep.subr.bf16.mxu1 %v641_v63 }
  0xec   :  { %644 = vmatpush3.bf16.msra.mxu1 %v641_v63 }
  0xef   :  { %599 = vmatmul.mubr.msk.f32.vlgmr.msra.gmra.mrb[0].mxu1 %vm282_vm2, %v227_v0 }
  0xf0   :  { %601 = vmatprep.mubr.msk.f32.mxu1 %vm282_vm2, %v228_v1 }
  0xf3   :  { %602 = vmatmul.mubr.msk.f32.gmra.mrb[2].mxu1 %vm282_vm2, %v229_v2 }
  0xf4   :  { %604 = vmatprep.mubr.msk.f32.mxu1 %vm282_vm2, %v230_v3 }
  0xf7   :  { %605 = vmatmul.mubr.msk.f32.gmra.mrb[4].mxu1 %vm282_vm2, %v231_v4 }
  0xf8   :  { %607 = vmatprep.mubr.msk.f32.mxu1 %vm282_vm2, %v232_v5 }
  0xfb   :  { %608 = vmatmul.mubr.msk.f32.gmra.mrb[6].mxu1 %vm282_vm2, %v233_v6 }
 0x1c2   :  { %v600_v12 = vpop.f32.mrb[0].mxu1 }
 0x1c3   :  { %v379_v14 = vadd.f32 %v600_v12, %v250_v9  ;;  %v373_v15 = vpop.f32.mrb[1].mxu1 }
 0x1c4   :  { %v374_v16 = vadd.f32 %v373_v15, %v245_v10 }
 0x1c5   :  { %v413_v17 = vmax.f32 %v379_v14, 0.0 }
 0x1c6   :  { %v412_v18 = vmax.f32 %v374_v16, 0.0  ;;  %v603_v19 = vpop.f32.mrb[2].mxu1 }
 0x1c7   :  { %v389_v20 = vadd.f32 %v603_v19, %v260_v11  ;;  %v383_v21 = vpop.f32.mrb[3].mxu1 }
 0x1c8   :  { %v646_v23 = vpack.c.bf16 %v413_v17, %v412_v18  ;;  %v384_v24 = vadd.f32 %v383_v21, %v255_v13 }
 0x1c9   :  { %v415_v26 = vmax.f32 %v389_v20, 0.0 }
 0x1ca   :  { %v414_v27 = vmax.f32 %v384_v24, 0.0  ;;  %v606_v28 = vpop.f32.mrb[4].mxu1  ;;  %647 = vmatpush3.bf16.msra.mxu0 %v646_v23 }
 0x1cb   :  { %v399_v29 = vadd.f32 %v606_v28, %v270_v22  ;;  %v393_v30 = vpop.f32.mrb[5].mxu1  ;;  %648 = vmatprep.subr.bf16.mxu0 %v689_v7 }
 0x1cc   :  { %v649_v31 = vpack.c.bf16 %v415_v26, %v414_v27  ;;  %v394_v32 = vadd.f32 %v393_v30, %v265_v25 }
 0x1cd   :  { %v417_v33 = vmax.f32 %v399_v29, 0.0 }
 0x1ce   :  { %v416_v35 = vmax.f32 %v394_v32, 0.0  ;;  %v609_v36 = vpop.f32.mrb[6].mxu1  ;;  %650 = vmatpush3.bf16.msra.mxu0 %v649_v31 }
 0x1cf   :  { %v409_v38 = vadd.f32 %v609_v36, %v280_v34  ;;  %v403_v39 = vpop.f32.mrb[7].mxu1  ;;  %651 = vmatprep.subr.bf16.mxu0 %v689_v7 }
 0x1d0   :  { %v652_v40 = vpack.c.bf16 %v417_v33, %v416_v35  ;;  %v404_v41 = vadd.f32 %v403_v39, %v275_v37 }
 0x1d1   :  { %v419_v42 = vmax.f32 %v409_v38, 0.0 }
 0x1d2   :  { %v418_v43 = vmax.f32 %v404_v41, 0.0  ;;  %653 = vmatpush3.bf16.msra.mxu0 %v652_v40 }
 0x1d3   :  { %654 = vmatprep.subr.bf16.mxu0 %v689_v7 }
 0x1d4   :  { %v655_v44 = vpack.c.bf16 %v419_v42, %v418_v43 }
 0x1d6   :  { %656 = vmatpush3.bf16.msra.mxu0 %v655_v44 }
 0x1d9   :  { %627 = vmatmul.mubr.msk.f32.vlgmr.msra.gmra.mrb[8].mxu0 %vm282_vm2, %v420_v45 }
 0x2ac   :  { %v496_v47 = vpop.f32.mrb[8].mxu0 }
 0x2ad   :  { %v497_v48 = vadd.f32 %v496_v47, %v425_v46  ;;  %v628_v49 = vpop.f32.mrb[9].mxu0 }
 0x2af   :  { %501 = vst.msk [vmem:[#allocation2] sm:$0x7] %vm500_vm4, %v497_v48 }
 0x2b0   :  { %675 = shalt.err (!%p672_p4)
}
 0x2b1   :  { %s676_s19 = scalar_lea.hbm %s874_s7, 64 }
 0x2b2   :  { %p677_p5 = scmp.ne.s32.totalorder %s874_s7, %s676_s19  ;;  %p680_p6 = scmp.lt.u32.totalorder %s676_s19, %s874_s7 }
 0x2b4   :  { %p682_p7 = pnand %p680_p6, %p677_p5 }
 0x2b6   :  { %685 = shalt.err (!%p682_p7)
}
 0x2b7   :  { %511 = dma.vmem_to_hbm [thread:$0]  %s509_s16, 64, %s874_s7, [#allocation3]  }
 0x2b8   :  { %686 = dma.done.wait [#allocation3], 64  }
 0x2b9   :  { %687 = vsyncadd [#allocation3], 4294967232 }
 0x2ba   :  { %515 = vsyncpa [#allocation3], 1 }

</bundles_post_ra>
